<compile_context>
chip_gen: v7x
topology: tpu7x:2x2x1
jax: 0.10.0
libtpu: 0.0.40
codegen_flags: <defaults>
</compile_context>

<pallas_src>
import functools
import math

import jax
import jax.numpy as jnp
from jax import lax
from jax.experimental import pallas as pl
from jax.experimental.pallas import tpu as pltpu

BCE_POS_WEIGHT = 20.0  # module default


def _tacotron2_loss_kernel(olens_ref, after_ref, before_ref, ys_ref,
                           logits_ref, labels_ref, out_ref, *, odim):
    gi = pl.program_id(0)
    B, Rt, W = after_ref.shape          # W = group * odim (lane-dense width)
    Lf = logits_ref.shape[1]            # frames covered by this tile (= Rt * group)

    olens = olens_ref[...]              # (B, 1) int32
    olens_d = olens * jnp.int32(odim)

    # Division-free non-pad mask over the lane-dense feature block:
    # flat = frame*odim + d with d < odim, so (flat < olen*odim) <=> (frame < olen).
    # (int32 is safe: wrapper asserts L*odim < 2**31.)
    r_io = lax.broadcasted_iota(jnp.int32, (Rt, W), 0)
    c_io = lax.broadcasted_iota(jnp.int32, (Rt, W), 1)
    flat = gi * (Rt * W) + r_io * W + c_io
    mask3 = flat[None, :, :] < olens_d[:, :, None]      # (B, Rt, W)

    # Frame mask for stop-token logits / labels.
    f_io = lax.broadcasted_iota(jnp.int32, (B, Lf), 1)
    mask2 = (gi * Lf + f_io) < olens                    # (B, Lf)

    # Load in native dtype (bf16 halves HBM traffic), upcast in-kernel.
    ys = ys_ref[...].astype(jnp.float32)
    after = after_ref[...].astype(jnp.float32)
    before = before_ref[...].astype(jnp.float32)

    # Mask the diffs once (select -> 0 also discards NaN/Inf from padded-edge
    # blocks) and reuse the masked values for both the L1 and MSE partials.
    da = jnp.where(mask3, after - ys, 0.0)
    db = jnp.where(mask3, before - ys, 0.0)
    abs_sum = jnp.sum(jnp.abs(da) + jnp.abs(db))
    sq_sum = jnp.sum(da * da + db * db)

    # BCEWithLogitsLoss with pos_weight p (PyTorch numerically-stable form):
    #   l = (1-y)*x + (1 + (p-1)*y) * (log1p(exp(-|x|)) + max(-x, 0))
    x = logits_ref[...].astype(jnp.float32)
    y = labels_ref[...].astype(jnp.float32)
    sp = jnp.log1p(jnp.exp(-jnp.abs(x))) + jnp.maximum(-x, 0.0)
    p = jnp.float32(BCE_POS_WEIGHT)
    bce_el = (1.0 - y) * x + (1.0 + (p - 1.0) * y) * sp
    bce_sum = jnp.sum(jnp.where(mask2, bce_el, 0.0))

    # Per-tile partials in one lane-dense (1,1,128) row:
    #   lane 0 -> sum(|da|+|db|), lane 1 -> sum(da^2+db^2), lane 2 -> bce sum.
    lane = lax.broadcasted_iota(jnp.int32, (1, 1, 128), 2)
    out_ref[...] = jnp.where(lane == 0, abs_sum,
                   jnp.where(lane == 1, sq_sum,
                   jnp.where(lane == 2, bce_sum, 0.0))).astype(jnp.float32)


def _vmem_capacity_bytes():
    """Trace-time VMEM capacity query with a conservative (v7x-sized) fallback."""
    try:
        info = pltpu.get_tpu_info()
        cap = getattr(info, "vmem_capacity_bytes", None)
        if cap:
            return int(cap)
    except Exception:
        pass
    return 64 * 1024 * 1024


def tacotron2_loss(after_outs, before_outs, logits, ys, labels, olens, *,
                   l_tile=None):
    """Returns (l1_loss, mse_loss, bce_loss) matching Tacotron2Loss.forward
    (use_masking=True, use_weighted_masking=False, bce_pos_weight=20.0)."""
    B, L, D = ys.shape
    assert L * D < 2 ** 31, "flat int32 frame index would overflow"

    # Lane-dense layout: (B, L, D) -> (B, L/g, g*D) with g*D = lcm(D, 128).
    g = 128 // math.gcd(D, 128)
    if L % g != 0:
        # TODO(synk): pad L in the wrapper instead of falling back to the
        # lane-sparse layout when L is not a multiple of the group factor.
        g = 1
    R, W = L // g, g * D
    if g > 1:
        after_f = after_outs.reshape(B, R, W)
        before_f = before_outs.reshape(B, R, W)
        ys_f = ys.reshape(B, R, W)
    else:
        after_f, before_f, ys_f = after_outs, before_outs, ys

    # Row-tile alignment: rows multiple of 8 (sublanes) AND rows*g multiple of
    # 128 (keeps the logits tile lane-aligned); full-extent blocks always legal.
    align = max(8, 128 // g)

    vmem_cap = _vmem_capacity_bytes()
    small_vmem = vmem_cap < 100 * 1024 * 1024          # v7x: 64 MiB per TC
    target_bytes = (4 if small_vmem else 8) * 1024 * 1024
    vmem_limit = (32 if small_vmem else 64) * 1024 * 1024

    itemsize = jnp.dtype(ys.dtype).itemsize
    if l_tile is not None:
        assert l_tile % g == 0, "l_tile (frames) must be a multiple of the group"
        rt = min(l_tile // g, R)
        assert rt == R or rt % align == 0, "l_tile must be L or properly aligned"
    else:
        row_bytes = max(1, B * W * itemsize)
        rt = (target_bytes // row_bytes) // align * align
        rt = max(rt, align)
        if rt >= R:
            rt = R
        # On v7x (2 TensorCores) keep the grid splittable so both cores get work.
        if small_vmem and rt == R and R >= 2 * align:
            rt = min(R, -(-pl.cdiv(R, 2) // align) * align)

    G = pl.cdiv(R, rt)
    lf = rt * g                                        # frames per grid step

    olens2 = jnp.clip(olens.astype(jnp.int32), 0, L).reshape(B, 1)

    kernel = functools.partial(_tacotron2_loss_kernel, odim=D)
    partials = pl.pallas_call(
        kernel,
        out_shape=jax.ShapeDtypeStruct((G, 1, 128), jnp.float32),
        grid=(G,),
        in_specs=[
            pl.BlockSpec((B, 1), lambda gi: (0, 0)),           # olens (fetched once)
            pl.BlockSpec((B, rt, W), lambda gi: (0, gi, 0)),   # after_outs
            pl.BlockSpec((B, rt, W), lambda gi: (0, gi, 0)),   # before_outs
            pl.BlockSpec((B, rt, W), lambda gi: (0, gi, 0)),   # ys
            pl.BlockSpec((B, lf), lambda gi: (0, gi)),         # logits
            pl.BlockSpec((B, lf), lambda gi: (0, gi)),         # labels
        ],
        out_specs=pl.BlockSpec((1, 1, 128), lambda gi: (gi, 0, 0)),
        compiler_params=pltpu.CompilerParams(
            dimension_semantics=("parallel",),
            vmem_limit_bytes=vmem_limit,
        ),
    )(olens2, after_f, before_f, ys_f, logits, labels)

    # n_frames hoisted out of the kernel; tiny final reduce + divides in JAX.
    n_frames = jnp.maximum(jnp.sum(olens2).astype(jnp.float32), jnp.float32(1.0))
    s = jnp.sum(partials[:, 0, :3], axis=0)            # [l1_sum, mse_sum, bce_sum]
    denom_feat = n_frames * jnp.float32(D)
    return s[0] / denom_feat, s[1] / denom_feat, s[2] / n_frames


def _reference(after_outs, before_outs, logits, ys, labels, olens):
    """Pure-JAX reference mirroring the PyTorch semantics (f32 math)."""
    B, L, D = ys.shape
    f32 = jnp.float32
    after_outs = after_outs.astype(f32)
    before_outs = before_outs.astype(f32)
    ys = ys.astype(f32)
    logits = logits.astype(f32)
    labels = labels.astype(f32)
    mask2d = (jnp.arange(L)[None, :] < olens[:, None]).astype(f32)
    mask3d = mask2d[:, :, None]
    n_frames = mask2d.sum()
    denom = n_frames * D
    da = (after_outs - ys) * mask3d
    db = (before_outs - ys) * mask3d
    l1 = (jnp.abs(da).sum() + jnp.abs(db).sum()) / denom
    mse = ((da ** 2).sum() + (db ** 2).sum()) / denom
    x, y = logits, labels
    sp = jnp.log1p(jnp.exp(-jnp.abs(x))) + jnp.maximum(-x, 0.0)
    bce_el = (1.0 - y) * x + (1.0 + (BCE_POS_WEIGHT - 1.0) * y) * sp
    bce = (bce_el * mask2d).sum() / n_frames
    return l1, mse, bce


def _make_inputs(key, B, L, D, olens_list, dtype=jnp.float32):
    k1, k2, k3, k4 = jax.random.split(key, 4)
    after_outs = jax.random.normal(k1, (B, L, D), jnp.float32).astype(dtype)
    before_outs = jax.random.normal(k2, (B, L, D), jnp.float32).astype(dtype)
    ys = jax.random.normal(k3, (B, L, D), jnp.float32).astype(dtype)
    logits = jax.random.normal(k4, (B, L), jnp.float32)
    olens = jnp.array(olens_list, dtype=jnp.int32)
    labels = jnp.zeros((B, L), jnp.float32)
    for b, ol in enumerate(olens_list):
        labels = labels.at[b, ol - 1].set(1.0)   # stop token at last valid frame
    return after_outs, before_outs, logits, ys, labels, olens


if __name__ == "__main__":
    key = jax.random.PRNGKey(0)
    kA, kB, kC = jax.random.split(key, 3)

    # Test A: tiny shapes, single tile (G=1), f32, lane-dense group g=4.
    a, b_, lg, y, lb, ol = _make_inputs(kA, B=2, L=8, D=32, olens_list=[8, 5])
    out = tacotron2_loss(a, b_, lg, y, lb, ol)
    jax.block_until_ready(out)
    ref = _reference(a, b_, lg, y, lb, ol)
    for got, exp in zip(out, ref):
        assert jnp.allclose(got, exp, rtol=1e-5, atol=1e-5), (got, exp)

    # Test B: multi-tile grid with ragged final block (L=200, tile=128 frames), f32.
    a, b_, lg, y, lb, ol = _make_inputs(kB, B=2, L=200, D=32, olens_list=[200, 173])
    out = tacotron2_loss(a, b_, lg, y, lb, ol, l_tile=128)
    jax.block_until_ready(out)
    ref = _reference(a, b_, lg, y, lb, ol)
    for got, exp in zip(out, ref):
        assert jnp.allclose(got, exp, rtol=1e-5, atol=1e-5), (got, exp)

    # Test C: bf16 feature tensors fed natively (upcast to f32 happens in-kernel).
    a, b_, lg, y, lb, ol = _make_inputs(kC, B=2, L=8, D=32, olens_list=[8, 6],
                                        dtype=jnp.bfloat16)
    out = tacotron2_loss(a, b_, lg, y, lb, ol)
    jax.block_until_ready(out)
    ref = _reference(a, b_, lg, y, lb, ol)   # reference also upcasts the bf16 inputs
    for got, exp in zip(out, ref):
        assert jnp.allclose(got, exp, rtol=1e-3, atol=1e-3), (got, exp)

    print("KERNEL_OK")
</pallas_src>

<mosaic_0001>
module attributes {stable_mosaic.version = 11 : i64} {
  func.func @_tacotron2_loss_kernel(%arg0: i32, %arg1: memref<2x1xi32, #tpu.memory_space<vmem>>, %arg2: memref<2x2x128xf32, #tpu.memory_space<vmem>>, %arg3: memref<2x2x128xf32, #tpu.memory_space<vmem>>, %arg4: memref<2x2x128xf32, #tpu.memory_space<vmem>>, %arg5: memref<2x8xf32, #tpu.memory_space<vmem>>, %arg6: memref<2x8xf32, #tpu.memory_space<vmem>>, %arg7: memref<1x1x128xf32, #tpu.memory_space<vmem>>) attributes {dimension_semantics = [#tpu.dimension_semantics<parallel>], iteration_bounds = array<i64: 1>, scalar_prefetch = 0 : i64, scratch_operands = 0 : i64, tpu.core_type = #tpu.core_type<tc>, window_params = [{pipeline_mode = #tpu.pipeline_mode<synchronous>, transform_indices = @transform_0, window_bounds = array<i64: 2, 1>}, {transform_indices = @transform_1, window_bounds = array<i64: 2, 2, 128>}, {transform_indices = @transform_2, window_bounds = array<i64: 2, 2, 128>}, {transform_indices = @transform_3, window_bounds = array<i64: 2, 2, 128>}, {transform_indices = @transform_4, window_bounds = array<i64: 2, 8>}, {transform_indices = @transform_5, window_bounds = array<i64: 2, 8>}, {transform_indices = @transform_6, window_bounds = array<i64: 1, 1, 128>}]} {
    %c0 = arith.constant 0 : index
    %c0_0 = arith.constant 0 : index
    %0 = vector.load %arg1[%c0, %c0_0] : memref<2x1xi32, #tpu.memory_space<vmem>>, vector<2x1xi32>
    %c32_i32 = arith.constant 32 : i32
    %1 = vector.broadcast %c32_i32 : i32 to vector<2x1xi32>
    %2 = arith.muli %0, %1 : vector<2x1xi32>
    %3 = tpu.iota {dimensions = array<i32: 0>} : vector<2x128xi32>
    %4 = tpu.iota {dimensions = array<i32: 1>} : vector<2x128xi32>
    %c256_i32 = arith.constant 256 : i32
    %5 = arith.muli %arg0, %c256_i32 : i32
    %c128_i32 = arith.constant 128 : i32
    %6 = vector.broadcast %c128_i32 : i32 to vector<2x128xi32>
    %7 = arith.muli %3, %6 : vector<2x128xi32>
    %8 = vector.broadcast %5 : i32 to vector<2x128xi32>
    %9 = arith.addi %8, %7 : vector<2x128xi32>
    %10 = arith.addi %9, %4 : vector<2x128xi32>
    %11 = vector.shape_cast %10 : vector<2x128xi32> to vector<1x2x128xi32>
    %12 = vector.shape_cast %2 : vector<2x1xi32> to vector<2x1x1xi32>
    %13 = vector.broadcast %11 : vector<1x2x128xi32> to vector<2x2x128xi32>
    %14 = vector.broadcast %12 : vector<2x1x1xi32> to vector<2x2x128xi32>
    %15 = arith.cmpi slt, %13, %14 : vector<2x2x128xi32>
    %16 = tpu.iota {dimensions = array<i32: 1>} : vector<2x8xi32>
    %c8_i32 = arith.constant 8 : i32
    %17 = arith.muli %arg0, %c8_i32 : i32
    %18 = vector.broadcast %17 : i32 to vector<2x8xi32>
    %19 = arith.addi %18, %16 : vector<2x8xi32>
    %20 = vector.broadcast %0 : vector<2x1xi32> to vector<2x8xi32>
    %21 = arith.cmpi slt, %19, %20 : vector<2x8xi32>
    %c0_1 = arith.constant 0 : index
    %c0_2 = arith.constant 0 : index
    %c0_3 = arith.constant 0 : index
    %22 = vector.load %arg4[%c0_1, %c0_2, %c0_3] : memref<2x2x128xf32, #tpu.memory_space<vmem>>, vector<2x2x128xf32>
    %c0_4 = arith.constant 0 : index
    %c0_5 = arith.constant 0 : index
    %c0_6 = arith.constant 0 : index
    %23 = vector.load %arg2[%c0_4, %c0_5, %c0_6] : memref<2x2x128xf32, #tpu.memory_space<vmem>>, vector<2x2x128xf32>
    %c0_7 = arith.constant 0 : index
    %c0_8 = arith.constant 0 : index
    %c0_9 = arith.constant 0 : index
    %24 = vector.load %arg3[%c0_7, %c0_8, %c0_9] : memref<2x2x128xf32, #tpu.memory_space<vmem>>, vector<2x2x128xf32>
    %25 = arith.subf %23, %22 : vector<2x2x128xf32>
    %cst = arith.constant 0.000000e+00 : f32
    %26 = vector.broadcast %cst : f32 to vector<2x2x128xf32>
    %27 = arith.select %15, %25, %26 : vector<2x2x128xi1>, vector<2x2x128xf32>
    %28 = arith.subf %24, %22 : vector<2x2x128xf32>
    %cst_10 = arith.constant 0.000000e+00 : f32
    %29 = vector.broadcast %cst_10 : f32 to vector<2x2x128xf32>
    %30 = arith.select %15, %28, %29 : vector<2x2x128xi1>, vector<2x2x128xf32>
    %31 = math.absf %27 : vector<2x2x128xf32>
    %32 = math.absf %30 : vector<2x2x128xf32>
    %33 = arith.addf %31, %32 : vector<2x2x128xf32>
    %34 = vector.shape_cast %33 : vector<2x2x128xf32> to vector<1x2x2x128xf32>
    %cst_11 = arith.constant dense<0.000000e+00> : vector<1xf32>
    %35 = vector.multi_reduction <add>, %34, %cst_11 [1, 2, 3] : vector<1x2x2x128xf32> to vector<1xf32>
    %36 = vector.shape_cast %35 : vector<1xf32> to vector<1x1x1x1xf32>
    %37 = vector.extract %36[0, 0, 0, 0] : f32 from vector<1x1x1x1xf32>
    %38 = arith.mulf %27, %27 : vector<2x2x128xf32>
    %39 = arith.mulf %30, %30 : vector<2x2x128xf32>
    %40 = arith.addf %38, %39 : vector<2x2x128xf32>
    %41 = vector.shape_cast %40 : vector<2x2x128xf32> to vector<1x2x2x128xf32>
    %cst_12 = arith.constant dense<0.000000e+00> : vector<1xf32>
    %42 = vector.multi_reduction <add>, %41, %cst_12 [1, 2, 3] : vector<1x2x2x128xf32> to vector<1xf32>
    %43 = vector.shape_cast %42 : vector<1xf32> to vector<1x1x1x1xf32>
    %44 = vector.extract %43[0, 0, 0, 0] : f32 from vector<1x1x1x1xf32>
    %c0_13 = arith.constant 0 : index
    %c0_14 = arith.constant 0 : index
    %45 = vector.load %arg5[%c0_13, %c0_14] : memref<2x8xf32, #tpu.memory_space<vmem>>, vector<2x8xf32>
    %c0_15 = arith.constant 0 : index
    %c0_16 = arith.constant 0 : index
    %46 = vector.load %arg6[%c0_15, %c0_16] : memref<2x8xf32, #tpu.memory_space<vmem>>, vector<2x8xf32>
    %47 = math.absf %45 : vector<2x8xf32>
    %cst_17 = arith.constant 0.000000e+00 : f32
    %48 = vector.broadcast %cst_17 : f32 to vector<2x8xf32>
    %49 = arith.subf %48, %47 : vector<2x8xf32>
    %50 = math.exp %49 : vector<2x8xf32>
    %51 = math.log1p %50 : vector<2x8xf32>
    %cst_18 = arith.constant 0.000000e+00 : f32
    %52 = vector.broadcast %cst_18 : f32 to vector<2x8xf32>
    %53 = arith.subf %52, %45 : vector<2x8xf32>
    %cst_19 = arith.constant 0.000000e+00 : f32
    %54 = vector.broadcast %cst_19 : f32 to vector<2x8xf32>
    %55 = arith.maximumf %53, %54 : vector<2x8xf32>
    %56 = arith.addf %51, %55 : vector<2x8xf32>
    %cst_20 = arith.constant 1.000000e+00 : f32
    %57 = vector.broadcast %cst_20 : f32 to vector<2x8xf32>
    %58 = arith.subf %57, %46 : vector<2x8xf32>
    %59 = arith.mulf %58, %45 : vector<2x8xf32>
    %cst_21 = arith.constant 2.000000e+01 : f32
    %cst_22 = arith.constant 1.000000e+00 : f32
    %60 = arith.subf %cst_21, %cst_22 : f32
    %61 = vector.broadcast %60 : f32 to vector<2x8xf32>
    %62 = arith.mulf %61, %46 : vector<2x8xf32>
    %cst_23 = arith.constant 1.000000e+00 : f32
    %63 = vector.broadcast %cst_23 : f32 to vector<2x8xf32>
    %64 = arith.addf %63, %62 : vector<2x8xf32>
    %65 = arith.mulf %64, %56 : vector<2x8xf32>
    %66 = arith.addf %59, %65 : vector<2x8xf32>
    %cst_24 = arith.constant 0.000000e+00 : f32
    %67 = vector.broadcast %cst_24 : f32 to vector<2x8xf32>
    %68 = arith.select %21, %66, %67 : vector<2x8xi1>, vector<2x8xf32>
    %69 = vector.shape_cast %68 : vector<2x8xf32> to vector<1x2x8xf32>
    %cst_25 = arith.constant dense<0.000000e+00> : vector<1xf32>
    %70 = vector.multi_reduction <add>, %69, %cst_25 [1, 2] : vector<1x2x8xf32> to vector<1xf32>
    %71 = vector.shape_cast %70 : vector<1xf32> to vector<1x1x1xf32>
    %72 = vector.extract %71[0, 0, 0] : f32 from vector<1x1x1xf32>
    %73 = tpu.iota {dimensions = array<i32: 2>} : vector<1x1x128xi32>
    %c0_i32 = arith.constant 0 : i32
    %74 = vector.broadcast %c0_i32 : i32 to vector<1x1x128xi32>
    %75 = arith.cmpi eq, %73, %74 : vector<1x1x128xi32>
    %c1_i32 = arith.constant 1 : i32
    %76 = vector.broadcast %c1_i32 : i32 to vector<1x1x128xi32>
    %77 = arith.cmpi eq, %73, %76 : vector<1x1x128xi32>
    %c2_i32 = arith.constant 2 : i32
    %78 = vector.broadcast %c2_i32 : i32 to vector<1x1x128xi32>
    %79 = arith.cmpi eq, %73, %78 : vector<1x1x128xi32>
    %cst_26 = arith.constant 0.000000e+00 : f32
    %80 = vector.broadcast %72 : f32 to vector<1x1x128xf32>
    %81 = vector.broadcast %cst_26 : f32 to vector<1x1x128xf32>
    %82 = arith.select %79, %80, %81 : vector<1x1x128xi1>, vector<1x1x128xf32>
    %83 = vector.broadcast %44 : f32 to vector<1x1x128xf32>
    %84 = arith.select %77, %83, %82 : vector<1x1x128xi1>, vector<1x1x128xf32>
    %85 = vector.broadcast %37 : f32 to vector<1x1x128xf32>
    %86 = arith.select %75, %85, %84 : vector<1x1x128xi1>, vector<1x1x128xf32>
    %c0_27 = arith.constant 0 : index
    %c0_28 = arith.constant 0 : index
    %c0_29 = arith.constant 0 : index
    %87 = vector.load %arg7[%c0_27, %c0_28, %c0_29] : memref<1x1x128xf32, #tpu.memory_space<vmem>>, vector<1x1x128xf32>
    tpu.vector_store %arg7[%c0_27, %c0_28, %c0_29], %86 {strides = array<i32>} : memref<1x1x128xf32, #tpu.memory_space<vmem>>, vector<1x1x128xf32>,
    return
  }
  func.func @transform_0(%arg0: i32) -> (i32, i32) {
    %c0_i32 = arith.constant 0 : i32
    %c0_i32_0 = arith.constant 0 : i32
    %c0_i32_1 = arith.constant 0 : i32
    return %c0_i32, %c0_i32_0 : i32, i32
  }
  func.func @transform_1(%arg0: i32) -> (i32, i32, i32) {
    %c0_i32 = arith.constant 0 : i32
    %c0_i32_0 = arith.constant 0 : i32
    %c0_i32_1 = arith.constant 0 : i32
    return %c0_i32, %arg0, %c0_i32_0 : i32, i32, i32
  }
  func.func @transform_2(%arg0: i32) -> (i32, i32, i32) {
    %c0_i32 = arith.constant 0 : i32
    %c0_i32_0 = arith.constant 0 : i32
    %c0_i32_1 = arith.constant 0 : i32
    return %c0_i32, %arg0, %c0_i32_0 : i32, i32, i32
  }
  func.func @transform_3(%arg0: i32) -> (i32, i32, i32) {
    %c0_i32 = arith.constant 0 : i32
    %c0_i32_0 = arith.constant 0 : i32
    %c0_i32_1 = arith.constant 0 : i32
    return %c0_i32, %arg0, %c0_i32_0 : i32, i32, i32
  }
  func.func @transform_4(%arg0: i32) -> (i32, i32) {
    %c0_i32 = arith.constant 0 : i32
    %c0_i32_0 = arith.constant 0 : i32
    return %c0_i32, %arg0 : i32, i32
  }
  func.func @transform_5(%arg0: i32) -> (i32, i32) {
    %c0_i32 = arith.constant 0 : i32
    %c0_i32_0 = arith.constant 0 : i32
    return %c0_i32, %arg0 : i32, i32
  }
  func.func @transform_6(%arg0: i32) -> (i32, i32, i32) {
    %c0_i32 = arith.constant 0 : i32
    %c0_i32_0 = arith.constant 0 : i32
    %c0_i32_1 = arith.constant 0 : i32
    return %arg0, %c0_i32, %c0_i32_0 : i32, i32, i32
  }
}

</mosaic_0001>

<bundles_post_ra>
// kernel: tpu_custom_call.1
= control target key start
LH: loop header
LB: loop body
LE: loop exit
PB: predicated region body
PF: predicated region fallthrough
CT: control target
= control target key end

     0   :  { %v26_v1 = vlaneseq  ;;  %v230_v2 = vmov 0   ;;  %v231_v3 = vmov 1966171168   ;;  %s314_s0 = inlined_call_operand.vmem [shape: s32[2,1], index: 0, kind: input, shape index: {}]   ;;  %s315_s1 = inlined_call_operand.vmem [shape: f32[2,2,128], index: 1, kind: input, shape index: {}]   ;;  %s316_s2 = inlined_call_operand.vmem [shape: f32[2,2,128], index: 2, kind: input, shape index: {}]   ;;  %s317_s3 = inlined_call_operand.vmem [shape: f32[2,2,128], index: 3, kind: input, shape index: {}]   ;;  %s318_s4 = inlined_call_operand.vmem [shape: f32[2,8], index: 4, kind: input, shape index: {}]   ;;  %s319_s5 = inlined_call_operand.vmem [shape: f32[2,8], index: 5, kind: input, shape index: {}]   ;;  %s320_s6 = inlined_call_operand.hbm [shape: f32[1,1,128], index: 6, kind: output, shape index: {}]  }
   0x1   :  { %v24_v0 = vld [vmem:[%s314_s0] sm:$0x3]  ;;  %200 = vset.pattern.permute.xlu0 %v230_v2  ;;  %v36_v4 = vunpack.c.l.s4 %v231_v3  ;;  %201 = vset.pattern.permute.xlu1 %v230_v2 }
   0x2   :  { %v27_v5 = vshrl.u32 %v26_v1, 7  ;;  %77 = vperm.xlu1 %201, %v24_v0   ;;  %v25_v6 = vmul.u32 32, %v24_v0 }
   0x3   :  { %v37_v7 = vunpack.c.0.s8 %v36_v4 }
   0x4   :  { %11 = vsyncpa [#allocation3], 0  ;;  %v59_v10 = vsub.s32 0, %v27_v5  ;;  %v131_v16 = vld [vmem:[%s318_s4] sm:$0x3]  ;;  %v274_v27 = vand.u32 127, %v26_v1 }
   0x5   :  { %v40_v8 = vsub.s32 %v37_v7, %v27_v5  ;;  %v133_v17 = vand.u32 2147483647, %v131_v16  ;;  %v146_v26 = vsub.f32 0.0, %v131_v16  ;;  %v31_v28 = vmul.u32 128, %v27_v5  ;;  %v132_v29 = vld [vmem:[%s319_s5] sm:$0x3] }
   0x6   :  { %v80_v32 = vld [vmem:[%s317_s3] sm:$0x3]  ;;  %v151_v36 = vmul.f32 19.0, %v132_v29  ;;  %v81_v41 = vld [vmem:[%s317_s3 + $0x2] sm:$0x3]  ;;  %v149_v46 = vsub.f32 1.0, %v132_v29 }
   0x7   :  { %v41_v9 = vrot.slane %v25_v6, %v40_v8  ;;  %v134_v18 = vsub.f32 0.0, %v133_v17  ;;  %v82_v33 = vld [vmem:[%s315_s1] sm:$0x3]  ;;  %v147_v35 = vmax.f32 %v146_v26, 0.0  ;;  %v34_v37 = vadd.s32 %v31_v28, %v274_v27  ;;  %v83_v42 = vld [vmem:[%s315_s1 + $0x2] sm:$0x3] }
   0x8   :  { %v84_v34 = vld [vmem:[%s316_s2] sm:$0x3]  ;;  %v86_v39 = vsub.f32 %v82_v33, %v80_v32  ;;  %v85_v43 = vld [vmem:[%s316_s2 + $0x2] sm:$0x3]  ;;  %v152_v47 = vadd.f32 1.0, %v151_v36  ;;  %v87_v50 = vsub.f32 %v83_v42, %v81_v41  ;;  %v150_v57 = vmul.f32 %v149_v46, %v131_v16  ;;  %s232_s12 = smov [#allocation2]  }
   0x9   :  { %v49_v11 = vrot.slane %v41_v9, %v40_v8  ;;  %v42_v12 = vcombine.high %v41_v9, %v41_v9  ;;  %v135_v19 = vmul.f32 1.442695, %v134_v18  ;;  %v90_v40 = vsub.f32 %v84_v34, %v80_v32  ;;  %s183_s13 = sshll.u32 %s232_s12, 4  ;;  %s184_s13 = int_to_ptr.vmem [resolvable:$true] %s183_s13 }
   0xa   :  { %v91_v51 = vsub.f32 %v85_v43, %v81_v41  ;;  %vm100_vm3 = vcmask 1041408   ;;  %vm156_vm5 = vcmask 58368   ;;  %vm169_vm6 = vcmp.eq.s32.totalorder %v274_v27, 2  ;;  %s206_s14 = scalar_lea.vmem %s184_s13, 16  ;;  %s210_s15 = scalar_lea.vmem %s184_s13, 32 }
   0xb   :  { %v60_v13 = vrot.slane %v49_v11, %v59_v10  ;;  %v56_v14 = vrot.slane %v42_v12, %v40_v8  ;;  %202 = vpow2.f32 %v135_v19  ;;  %vm168_vm7 = vcmp.eq.s32.totalorder %v274_v27, 1  ;;  %p207_p0 = scmp.ne.s32.totalorder %s184_s13, %s206_s14  ;;  %p211_p1 = scmp.lt.s32.totalorder %s184_s13, %s184_s13 }
   0xc   :  { %vm167_vm8 = vcmp.eq.s32.totalorder %v274_v27, 0  ;;  %p212_p2 = scmp.lt.s32.totalorder %s210_s15, %s206_s14 }
   0xd   :  { %66 = vperm.xlu0 %200, %v60_v13   ;;  %v64_v15 = vrot.slane %v56_v14, %v59_v10 }
   0xe   :  { %p213_p3 = por %p212_p2, %p211_p1 }
  0x10   :  { %p214_p4 = pnand %p213_p3, %p207_p0 }
  0x11   :  { %69 = vperm.xlu0 %200, %v64_v15  }
  0x15   :  { %v203_v20 = vpop.eup %202 }
  0x16   :  { %v137_v21 = vadd.f32 1.0, %v203_v20  ;;  %v140_v22 = vmul.f32 -0.5, %v203_v20  ;;  %v143_v25 = vand.u32 2147483647, %v203_v20 }
  0x18   :  { %204 = vlog2.f32 %v137_v21  ;;  %v141_v23 = vadd.f32 1.0, %v140_v22  ;;  %vm144_vm0 = vcmp.lt.f32.partialorder %v143_v25, 0.0004427343 }
  0x1a   :  { %v142_v31 = vmul.f32 %v203_v20, %v141_v23 }
  0x22   :  { %v205_v24 = vpop.eup %204 }
  0x23   :  { %v139_v30 = vmul.f32 0.6931472, %v205_v24 }
  0x25   :  { %v145_v38 = vsel %vm144_vm0, %v142_v31, %v139_v30 }
  0x26   :  { %v148_v45 = vadd.f32 %v147_v35, %v145_v38 }
  0x28   :  { %v153_v58 = vmul.f32 %v152_v47, %v148_v45 }
  0x2a   :  { %v154_v4 = vadd.f32 %v153_v58, %v150_v57 }
  0x81   :  { %v78_v61 = vpop.permute.xlu1 %77 }
  0x82   :  { %vm79_vm4 = vcmp.lt.s32.totalorder %v274_v27, %v78_v61 }
  0x83   :  { %v155_v13 = vsel %vm79_vm4, %v154_v4, 0.0 }
  0x84   :  { %v157_v14 = vsel %vm156_vm5, %v155_v13, 0.0 }
  0x8c   :  { %v67_v44 = vpop.permute.xlu0 %66 }
  0x8d   :  { %vm71_vm1 = vcmp.lt.s32.totalorder %v34_v37, %v67_v44 }
  0x8e   :  { %v88_v48 = vsel %vm71_vm1, %v86_v39, 0.0  ;;  %v92_v49 = vsel %vm71_vm1, %v90_v40, 0.0 }
  0x8f   :  { %v94_v52 = vand.u32 2147483647, %v88_v48  ;;  %v96_v53 = vand.u32 2147483647, %v92_v49  ;;  %v113_v54 = vmul.f32 %v88_v48, %v88_v48  ;;  %v115_v55 = vmul.f32 %v92_v49, %v92_v49 }
  0x90   :  { %v70_v56 = vpop.permute.xlu0 %69 }
  0x91   :  { %vm72_vm2 = vcmp.lt.s32.totalorder %v34_v37, %v70_v56  ;;  %v117_v62 = vadd.f32 %v115_v55, %v113_v54  ;;  %v98_v63 = vadd.f32 %v96_v53, %v94_v52 }
  0x92   :  { %v89_v59 = vsel %vm72_vm2, %v87_v50, 0.0  ;;  %v93_v60 = vsel %vm72_vm2, %v91_v51, 0.0 }
  0x93   :  { %v95_v0 = vand.u32 2147483647, %v89_v59  ;;  %v97_v1 = vand.u32 2147483647, %v93_v60  ;;  %v114_v2 = vmul.f32 %v89_v59, %v89_v59  ;;  %v116_v3 = vmul.f32 %v93_v60, %v93_v60 }
  0x94   :  { %v119_v7 = vsel %vm100_vm3, %v117_v62, 0.0  ;;  %v101_v9 = vsel %vm100_vm3, %v98_v63, 0.0 }
  0x95   :  { %v118_v5 = vadd.f32 %v116_v3, %v114_v2  ;;  %v99_v6 = vadd.f32 %v97_v1, %v95_v0 }
  0x97   :  { %v120_v8 = vsel %vm100_vm3, %v118_v5, 0.0  ;;  %v102_v10 = vsel %vm100_vm3, %v99_v6, 0.0 }
  0x98   :  { %v121_v11 = vadd.f32 %v120_v8, %v119_v7  ;;  %v103_v12 = vadd.f32 %v102_v10, %v101_v9 }
  0x9a   :  { %122 = vadd.xlane.f32.xlu0 %v121_v11  ;;  %104 = vadd.xlane.f32.xlu1 %v103_v12 }
  0x9e   :  { %158 = vadd.xlane.f32.xlu0 %v157_v14 }
 0x127   :  { %v123_v15 = vpop.xlane.xlu0 %122  ;;  %v105_v16 = vpop.xlane.xlu1 %104 }
 0x128   :  { %v124_v17 = vrot.slane %v123_v15, 4  ;;  %v106_v18 = vrot.slane %v105_v16, 4 }
 0x12a   :  { %v125_v19 = vadd.f32 %v124_v17, %v123_v15  ;;  %v107_v20 = vadd.f32 %v106_v18, %v105_v16 }
 0x12b   :  { %v159_v21 = vpop.xlane.xlu0 %158 }
 0x12c   :  { %v126_v22 = vrot.slane %v125_v19, 2  ;;  %v108_v23 = vrot.slane %v107_v20, 2  ;;  %v160_v24 = vrot.slane %v159_v21, 4 }
 0x12e   :  { %v161_v25 = vadd.f32 %v160_v24, %v159_v21  ;;  %v109_v26 = vadd.f32 %v108_v23, %v107_v20  ;;  %v127_v28 = vadd.f32 %v126_v22, %v125_v19 }
 0x130   :  { %v162_v29 = vrot.slane %v161_v25, 2  ;;  %v110_v30 = vrot.slane %v109_v26, 1  ;;  %v128_v31 = vrot.slane %v127_v28, 1 }
 0x132   :  { %v163_v32 = vadd.f32 %v162_v29, %v161_v25  ;;  %v111_v33 = vadd.f32 %v110_v30, %v109_v26  ;;  %v129_v34 = vadd.f32 %v128_v31, %v127_v28 }
 0x134   :  { %191 = vpush %v111_v33  ;;  %v164_v35 = vrot.slane %v163_v32, 1 }
 0x135   :  { %193 = vpush %v129_v34 }
 0x136   :  { %v165_v36 = vadd.f32 %v164_v35, %v163_v32 }
 0x138   :  { %195 = vpush %v165_v36 }
 0x165   :  { %s192_s1 = spop %191 }
 0x166   :  { %s194_s2 = spop %193  ;;  %v174_v40 = vstv %s192_s1 }
 0x167   :  { %v172_v38 = vstv %s194_s2 }
 0x169   :  { %s196_s3 = spop %195 }
 0x16a   :  { %v170_v37 = vstv %s196_s3 }
 0x16b   :  { %v171_v39 = vsel %vm169_vm6, %v170_v37, 0.0 }
 0x16c   :  { %v173_v41 = vsel %vm168_vm7, %v172_v38, %v171_v39 }
 0x16d   :  { %v175_v42 = vsel %vm167_vm8, %v174_v40, %v173_v41 }
 0x16e   :  { %176 = vst [vmem:[#allocation2] sm:$0x1] %v175_v42 }
 0x16f   :  { %217 = shalt.err (!%p214_p4)
}
 0x170   :  { %s218_s18 = scalar_lea.hbm %s320_s6, 16 }
 0x171   :  { %p219_p5 = scmp.ne.s32.totalorder %s320_s6, %s218_s18  ;;  %p222_p6 = scmp.lt.u32.totalorder %s218_s18, %s320_s6 }
 0x173   :  { %p224_p7 = pnand %p222_p6, %p219_p5 }
 0x175   :  { %227 = shalt.err (!%p224_p7)
}
 0x176   :  { %186 = dma.vmem_to_hbm [thread:$0]  %s184_s13, 16, %s320_s6, [#allocation3]  }
 0x177   :  { %228 = dma.done.wait [#allocation3], 16  }
 0x178   :  { %229 = vsyncadd [#allocation3], 4294967280 }
 0x179   :  { %190 = vsyncpa [#allocation3], 1 }

</bundles_post_ra>
